<compile_context>
chip_gen: v6e
topology: v6e:2x2x1
jax: 0.10.0
libtpu: 0.0.40
codegen_flags: <defaults>
</compile_context>

<pallas_src>
import math
from functools import partial

import jax
import jax.numpy as jnp
from jax import lax
from jax.experimental import pallas as pl
from jax.experimental.pallas import tpu as pltpu

_INV_SQRT2 = 1.0 / math.sqrt(2.0)


def _round_up(x, m):
    return ((x + m - 1) // m) * m


def _gelu_exact(x):
    # matches torch.nn.GELU default: 0.5 * x * (1 + erf(x / sqrt(2)))
    return 0.5 * x * (1.0 + lax.erf(x * _INV_SQRT2))


def _vmem_limit(bytes_needed):
    # Explicit scoped-VMEM budget: never below the 32 MiB default scoped
    # limit, never above the 64 MiB v7x physical VMEM.
    return int(min(64 * 2**20, max(32 * 2**20, 2 * bytes_needed)))


def _pad_tokens(x, tm):
    """Pad rows of (N, C) to a multiple of the token tile. -> (x, tm_eff, n_pad)."""
    n = x.shape[0]
    n_pad = _round_up(n, 8)
    tm_eff = min(_round_up(tm, 8), n_pad)
    n_pad = _round_up(n_pad, tm_eff)
    if n_pad != n:
        x = jnp.pad(x, ((0, n_pad - n), (0, 0)))
    return x, tm_eff, n_pad


# ----------------------------------------------------------------------------
# Linear:  y = x @ W + b
# ----------------------------------------------------------------------------
def _linear_kernel(x_ref, w_ref, b_ref, o_ref):
    y = jnp.dot(x_ref[...], w_ref[...], preferred_element_type=jnp.float32)
    y = y + b_ref[...].astype(jnp.float32)
    o_ref[...] = y.astype(o_ref.dtype)


def linear_pallas(x, w, b, *, tm=256, compute_dtype=None):
    """x: (N, K); w: (K, M); b: (M,) -> (N, M)."""
    out_dtype = x.dtype
    n, kdim = x.shape
    m = w.shape[1]

    if compute_dtype is not None:  # bf16 MXU path (v6e/v7x); f32 accumulate in-kernel
        x, w = x.astype(compute_dtype), w.astype(compute_dtype)

    # Lane-dense output: pad out-features to a multiple of 128 (zero columns).
    m_pad = _round_up(m, 128)
    if m_pad != m:
        w = jnp.pad(w, ((0, 0), (0, m_pad - m)))
        b = jnp.pad(b, ((0, m_pad - m),))
    b2d = b.reshape(1, m_pad)

    x, tm_eff, n_pad = _pad_tokens(x, tm)

    need = (w.size * w.dtype.itemsize + b2d.size * b2d.dtype.itemsize
            + 2 * tm_eff * (kdim * x.dtype.itemsize
                            + m_pad * jnp.dtype(out_dtype).itemsize))

    out = pl.pallas_call(
        _linear_kernel,
        out_shape=jax.ShapeDtypeStruct((n_pad, m_pad), out_dtype),
        grid_spec=pltpu.PrefetchScalarGridSpec(
            num_scalar_prefetch=0,
            grid=(n_pad // tm_eff,),
            in_specs=[
                pl.BlockSpec((tm_eff, kdim), lambda i: (i, 0)),      # x tile
                pl.BlockSpec((kdim, m_pad), lambda i: (0, 0)),       # W (resident)
                pl.BlockSpec((1, m_pad), lambda i: (0, 0)),          # b
            ],
            out_specs=pl.BlockSpec((tm_eff, m_pad), lambda i: (i, 0)),
        ),
        compiler_params=pltpu.CompilerParams(
            dimension_semantics=("parallel",),
            vmem_limit_bytes=_vmem_limit(need)),
    )(x, w, b2d)
    return out[:n, :m]


# ----------------------------------------------------------------------------
# Fused MLP:  y = GELU(x @ W1 + b1) @ W2 + b2, hidden dim streamed in K slabs
# ----------------------------------------------------------------------------
def _mlp_kernel(x_ref, w1_ref, b1_ref, w2_ref, b2_ref, o_ref, acc_ref):
    kk = pl.program_id(1)

    @pl.when(kk == 0)
    def _():
        acc_ref[...] = jnp.zeros_like(acc_ref)

    # fc1 slab: (tm, Cin) @ (Cin, tk) + b1-slab, f32 accumulation on the MXU.
    h = jnp.dot(x_ref[...], w1_ref[...], preferred_element_type=jnp.float32)
    h = h + b1_ref[...].astype(jnp.float32)
    h = _gelu_exact(h)  # exact erf GELU, kept in f32 (v5e has no bf16 VPU/EUP)
    # dropout(p=0.0) == identity.
    # TODO(synk): p>0 would need pltpu.prng_seed / pltpu.prng_random_bits.

    # fc2 slab: stream (tk, Cout) and accumulate into the resident f32 tile.
    acc_ref[...] += jnp.dot(h.astype(w2_ref.dtype), w2_ref[...],
                            preferred_element_type=jnp.float32)

    @pl.when(kk == pl.num_programs(1) - 1)
    def _():
        o_ref[...] = (acc_ref[...]
                      + b2_ref[...].astype(jnp.float32)).astype(o_ref.dtype)


def mlp_pallas(x, w1, b1, w2, b2, *, tm=256, tk=512, compute_dtype=None):
    """x:(N,Cin) w1:(Cin,H) b1:(H,) w2:(H,Cout) b2:(Cout,) -> (N,Cout)."""
    out_dtype = x.dtype
    n, c_in = x.shape
    hidden = w1.shape[1]
    c_out = w2.shape[1]

    if compute_dtype is not None:
        x, w1, w2 = (a.astype(compute_dtype) for a in (x, w1, w2))

    # Lane-dense output features (pad Cout to a multiple of 128 with zeros).
    c_out_pad = _round_up(c_out, 128)
    if c_out_pad != c_out:
        w2 = jnp.pad(w2, ((0, 0), (0, c_out_pad - c_out)))
        b2 = jnp.pad(b2, ((0, c_out_pad - c_out),))

    # Hidden dim streamed in K slabs; zero-pad it to a slab multiple.
    # Exact: GELU(0) == 0 and the padded W2 rows are zero.
    tk_eff = min(_round_up(tk, 128), _round_up(hidden, 128))
    hid_pad = _round_up(hidden, tk_eff)
    if hid_pad != hidden:
        w1 = jnp.pad(w1, ((0, 0), (0, hid_pad - hidden)))
        b1 = jnp.pad(b1, ((0, hid_pad - hidden),))
        w2 = jnp.pad(w2, ((0, hid_pad - hidden), (0, 0)))

    b1_2d = b1.reshape(1, hid_pad)
    b2_2d = b2.reshape(1, c_out_pad)

    x, tm_eff, n_pad = _pad_tokens(x, tm)
    grid = (n_pad // tm_eff, hid_pad // tk_eff)

    itm = x.dtype.itemsize
    need = (2 * itm * (tm_eff * c_in + c_in * tk_eff + tk_eff + tk_eff * c_out_pad)
            + 2 * tm_eff * c_out_pad * jnp.dtype(out_dtype).itemsize
            + c_out_pad * b2_2d.dtype.itemsize
            + 4 * tm_eff * c_out_pad)  # f32 accumulator scratch

    out = pl.pallas_call(
        _mlp_kernel,
        out_shape=jax.ShapeDtypeStruct((n_pad, c_out_pad), out_dtype),
        grid_spec=pltpu.PrefetchScalarGridSpec(
            num_scalar_prefetch=0,
            grid=grid,
            in_specs=[
                pl.BlockSpec((tm_eff, c_in), lambda i, k: (i, 0)),        # x tile
                pl.BlockSpec((c_in, tk_eff), lambda i, k: (0, k)),        # W1 slab
                pl.BlockSpec((1, tk_eff), lambda i, k: (0, k)),           # b1 slab
                pl.BlockSpec((tk_eff, c_out_pad), lambda i, k: (k, 0)),   # W2 slab
                pl.BlockSpec((1, c_out_pad), lambda i, k: (0, 0)),        # b2
            ],
            out_specs=pl.BlockSpec((tm_eff, c_out_pad), lambda i, k: (i, 0)),
            scratch_shapes=[pltpu.VMEM((tm_eff, c_out_pad), jnp.float32)],
        ),
        compiler_params=pltpu.CompilerParams(
            dimension_semantics=("parallel", "arbitrary"),
            vmem_limit_bytes=_vmem_limit(need)),
    )(x, w1, b1_2d, w2, b2_2d)
    return out[:n, :c_out]


# ----------------------------------------------------------------------------
# LayerNorm over the feature (last) dim
# ----------------------------------------------------------------------------
def _layernorm_kernel(x_ref, g_ref, b_ref, o_ref, *, eps):
    xv = x_ref[...].astype(jnp.float32)
    mean = jnp.mean(xv, axis=-1, keepdims=True)
    xc = xv - mean
    var = jnp.mean(xc * xc, axis=-1, keepdims=True)
    y = xc * lax.rsqrt(var + eps)
    y = y * g_ref[...].astype(jnp.float32) + b_ref[...].astype(jnp.float32)
    o_ref[...] = y.astype(o_ref.dtype)


def layernorm_pallas(x, gamma, beta, *, eps=1e-5, tm=256):
    n, c = x.shape
    x, tm_eff, n_pad = _pad_tokens(x, tm)
    out = pl.pallas_call(
        partial(_layernorm_kernel, eps=eps),
        out_shape=jax.ShapeDtypeStruct((n_pad, c), x.dtype),
        grid_spec=pltpu.PrefetchScalarGridSpec(
            num_scalar_prefetch=0,
            grid=(n_pad // tm_eff,),
            in_specs=[
                pl.BlockSpec((tm_eff, c), lambda i: (i, 0)),
                pl.BlockSpec((1, c), lambda i: (0, 0)),
                pl.BlockSpec((1, c), lambda i: (0, 0)),
            ],
            out_specs=pl.BlockSpec((tm_eff, c), lambda i: (i, 0)),
        ),
        compiler_params=pltpu.CompilerParams(
            dimension_semantics=("parallel",)),
    )(x, gamma.reshape(1, c), beta.reshape(1, c))
    return out[:n]


# ----------------------------------------------------------------------------
# Attention core: per-(batch*head) softmax(q k^T * scale) @ v
# ----------------------------------------------------------------------------
def _attn_kernel(q_ref, k_ref, v_ref, o_ref, *, scale):
    q = q_ref[...].astype(jnp.float32)
    k = k_ref[...].astype(jnp.float32)
    v = v_ref[...]
    # scores = q @ k^T (contract head_dim; no explicit transpose materialized)
    s = lax.dot_general(q, k, (((1,), (1,)), ((), ())),
                        preferred_element_type=jnp.float32) * scale
    s = s - jnp.max(s, axis=-1, keepdims=True)
    p = jnp.exp(s)
    p = p / jnp.sum(p, axis=-1, keepdims=True)
    # attn_drop(p=0.0) == identity
    o = jnp.dot(p.astype(v.dtype), v, preferred_element_type=jnp.float32)
    o_ref[...] = o.astype(o_ref.dtype)


def attention_core_pallas(q, k, v, *, scale):
    """q, k, v: (B*H, N, head_dim) -> (B*H, N, head_dim)."""
    bh, n, hd = q.shape
    spec = pl.BlockSpec((None, n, hd), lambda i: (i, 0, 0))
    return pl.pallas_call(
        partial(_attn_kernel, scale=scale),
        out_shape=jax.ShapeDtypeStruct((bh, n, hd), q.dtype),
        grid_spec=pltpu.PrefetchScalarGridSpec(
            num_scalar_prefetch=0,
            grid=(bh,),
            in_specs=[spec, spec, spec],
            out_specs=pl.BlockSpec((None, n, hd), lambda i: (i, 0, 0)),
        ),
        compiler_params=pltpu.CompilerParams(
            dimension_semantics=("parallel",)),
    )(q, k, v)


# ----------------------------------------------------------------------------
# VisionTransformer forward (single tensor input; head == Identity)
# ----------------------------------------------------------------------------
def vit_forward(params, x, *, num_heads, patch_size, compute_dtype=None):
    B, C, H, W = x.shape
    p = patch_size
    gh, gw = H // p, W // p

    # PatchEmbed: Conv2d(kernel=stride=patch) == patch extraction + matmul.
    patches = x.reshape(B, C, gh, p, gw, p)
    patches = patches.transpose(0, 2, 4, 1, 3, 5).reshape(B * gh * gw, C * p * p)
    tok = linear_pallas(patches, params["patch_embed_w"], params["patch_embed_b"],
                        compute_dtype=compute_dtype)
    D = params["patch_embed_w"].shape[1]
    tok = tok.reshape(B, gh * gw, D)

    cls = jnp.broadcast_to(params["cls_token"], (B, 1, D))
    xs = jnp.concatenate([cls, tok], axis=1)       # (B, N, D)
    xs = xs + params["pos_embed"]                  # npatch == N: no interpolation
    N = xs.shape[1]

    head_dim = D // num_heads
    scale = head_dim ** -0.5

    for blk in params["blocks"]:
        # --- Attention sub-block ---
        h = layernorm_pallas(xs.reshape(B * N, D), blk["ln1_g"], blk["ln1_b"])
        qkv = linear_pallas(h, blk["qkv_w"], blk["qkv_b"],
                            compute_dtype=compute_dtype)
        qkv = qkv.reshape(B, N, 3, num_heads, head_dim).transpose(2, 0, 3, 1, 4)
        q = qkv[0].reshape(B * num_heads, N, head_dim)
        k = qkv[1].reshape(B * num_heads, N, head_dim)
        v = qkv[2].reshape(B * num_heads, N, head_dim)
        o = attention_core_pallas(q, k, v, scale=scale)
        o = o.reshape(B, num_heads, N, head_dim).transpose(0, 2, 1, 3)
        o = linear_pallas(o.reshape(B * N, D), blk["proj_w"], blk["proj_b"],
                          compute_dtype=compute_dtype)
        xs = xs + o.reshape(B, N, D)               # drop_path / proj_drop are 0.0

        # --- MLP sub-block ---
        h = layernorm_pallas(xs.reshape(B * N, D), blk["ln2_g"], blk["ln2_b"])
        m = mlp_pallas(h, blk["fc1_w"], blk["fc1_b"], blk["fc2_w"], blk["fc2_b"],
                       compute_dtype=compute_dtype)
        xs = xs + m.reshape(B, N, D)

    xs = layernorm_pallas(xs.reshape(B * N, D), params["norm_g"], params["norm_b"])
    return xs.reshape(B, N, D)[:, 0]               # CLS token; head == Identity


# ----------------------------------------------------------------------------
# Pure-JAX reference (mirrors the PyTorch forward)
# ----------------------------------------------------------------------------
def _ref_ln(x, g, b, eps=1e-5):
    mean = jnp.mean(x, axis=-1, keepdims=True)
    var = jnp.mean((x - mean) ** 2, axis=-1, keepdims=True)
    return (x - mean) / jnp.sqrt(var + eps) * g + b


def vit_reference(params, x, *, num_heads, patch_size):
    B, C, H, W = x.shape
    p = patch_size
    gh, gw = H // p, W // p
    patches = x.reshape(B, C, gh, p, gw, p).transpose(0, 2, 4, 1, 3, 5)
    patches = patches.reshape(B, gh * gw, C * p * p)
    tok = patches @ params["patch_embed_w"] + params["patch_embed_b"]
    D = tok.shape[-1]
    xs = jnp.concatenate(
        [jnp.broadcast_to(params["cls_token"], (B, 1, D)), tok], axis=1)
    xs = xs + params["pos_embed"]
    N = xs.shape[1]
    hd = D // num_heads
    scale = hd ** -0.5
    for blk in params["blocks"]:
        h = _ref_ln(xs, blk["ln1_g"], blk["ln1_b"])
        qkv = (h @ blk["qkv_w"] + blk["qkv_b"]).reshape(B, N, 3, num_heads, hd)
        qkv = qkv.transpose(2, 0, 3, 1, 4)
        q, k, v = qkv[0], qkv[1], qkv[2]
        attn = jax.nn.softmax(jnp.einsum("bhqd,bhkd->bhqk", q, k) * scale, axis=-1)
        o = jnp.einsum("bhqk,bhkd->bhqd", attn, v)
        o = o.transpose(0, 2, 1, 3).reshape(B, N, D)
        xs = xs + (o @ blk["proj_w"] + blk["proj_b"])
        h = _ref_ln(xs, blk["ln2_g"], blk["ln2_b"])
        hm = h @ blk["fc1_w"] + blk["fc1_b"]
        hm = 0.5 * hm * (1.0 + lax.erf(hm * _INV_SQRT2))
        xs = xs + (hm @ blk["fc2_w"] + blk["fc2_b"])
    xs = _ref_ln(xs, params["norm_g"], params["norm_b"])
    return xs[:, 0]


if __name__ == "__main__":
    # Small ViT consistent with the module: 32x32 image, patch 16 -> 4 patches
    # + CLS = 5 tokens, embed_dim 64, 4 heads, mlp hidden 256, depth 2,
    # num_classes=0 (head == Identity), all dropout/drop-path probs 0.0.
    B, C_IN, IMG, PATCH = 2, 3, 32, 16
    EMBED, DEPTH, HEADS = 64, 2, 4
    HIDDEN = int(EMBED * 4.0)
    NPATCH = (IMG // PATCH) ** 2

    key = jax.random.PRNGKey(0)
    keys = iter(jax.random.split(key, 64))
    nk = lambda: next(keys)
    nrm = lambda shape, std=0.02: std * jax.random.normal(nk(), shape, jnp.float32)

    params = {
        "patch_embed_w": nrm((C_IN * PATCH * PATCH, EMBED)),
        "patch_embed_b": nrm((EMBED,)),
        "cls_token": nrm((1, 1, EMBED)),
        "pos_embed": nrm((1, NPATCH + 1, EMBED)),
        "norm_g": 1.0 + nrm((EMBED,)),
        "norm_b": nrm((EMBED,)),
        "blocks": [],
    }
    for _ in range(DEPTH):
        params["blocks"].append({
            "ln1_g": 1.0 + nrm((EMBED,)), "ln1_b": nrm((EMBED,)),
            "qkv_w": nrm((EMBED, 3 * EMBED)),
            "qkv_b": jnp.zeros((3 * EMBED,), jnp.float32),   # qkv_bias=False
            "proj_w": nrm((EMBED, EMBED)), "proj_b": nrm((EMBED,)),
            "ln2_g": 1.0 + nrm((EMBED,)), "ln2_b": nrm((EMBED,)),
            "fc1_w": nrm((EMBED, HIDDEN)), "fc1_b": nrm((HIDDEN,)),
            "fc2_w": nrm((HIDDEN, EMBED)), "fc2_b": nrm((EMBED,)),
        })

    x = jax.random.normal(nk(), (B, C_IN, IMG, IMG), jnp.float32)

    out = vit_forward(params, x, num_heads=HEADS, patch_size=PATCH)
    out = jax.block_until_ready(out)
    assert out.shape == (B, EMBED)

    ref = vit_reference(params, x, num_heads=HEADS, patch_size=PATCH)
    assert jnp.allclose(out, ref, atol=1e-3, rtol=1e-3), (
        f"mismatch vs reference, max|err|={jnp.max(jnp.abs(out - ref))}")

    print("KERNEL_OK")
</pallas_src>

<mosaic_0001>
module attributes {stable_mosaic.version = 11 : i64} {
  func.func @_linear_kernel(%arg0: i32, %arg1: memref<8x768xf32, #tpu.memory_space<vmem>>, %arg2: memref<768x128xf32, #tpu.memory_space<vmem>>, %arg3: memref<1x128xf32, #tpu.memory_space<vmem>>, %arg4: memref<8x128xf32, #tpu.memory_space<vmem>>) attributes {dimension_semantics = [#tpu.dimension_semantics<parallel>], iteration_bounds = array<i64: 1>, scalar_prefetch = 0 : i64, scratch_operands = 0 : i64, tpu.core_type = #tpu.core_type<tc>, window_params = [{transform_indices = @transform_0, window_bounds = array<i64: 8, 768>}, {pipeline_mode = #tpu.pipeline_mode<synchronous>, transform_indices = @transform_1, window_bounds = array<i64: 768, 128>}, {pipeline_mode = #tpu.pipeline_mode<synchronous>, transform_indices = @transform_2, window_bounds = array<i64: 1, 128>}, {transform_indices = @transform_3, window_bounds = array<i64: 8, 128>}]} {
    %c0 = arith.constant 0 : index
    %c0_0 = arith.constant 0 : index
    %0 = vector.load %arg1[%c0, %c0_0] : memref<8x768xf32, #tpu.memory_space<vmem>>, vector<8x768xf32>
    %c0_1 = arith.constant 0 : index
    %c0_2 = arith.constant 0 : index
    %1 = vector.load %arg2[%c0_1, %c0_2] : memref<768x128xf32, #tpu.memory_space<vmem>>, vector<768x128xf32>
    %cst = arith.constant dense<0.000000e+00> : vector<8x128xf32>
    %2 = tpu.matmul %0, %1, %cst {dimension_numbers = #tpu.dot_dimension_numbers<[1], [0], [0], [1], [0, 0, 1, 1], [], []>} : vector<8x768xf32>, vector<768x128xf32>, vector<8x128xf32> -> vector<8x128xf32>
    %c0_3 = arith.constant 0 : index
    %c0_4 = arith.constant 0 : index
    %3 = vector.load %arg3[%c0_3, %c0_4] : memref<1x128xf32, #tpu.memory_space<vmem>>, vector<1x128xf32>
    %4 = vector.broadcast %3 : vector<1x128xf32> to vector<8x128xf32>
    %5 = arith.addf %2, %4 : vector<8x128xf32>
    %c0_5 = arith.constant 0 : index
    %c0_6 = arith.constant 0 : index
    %6 = vector.load %arg4[%c0_5, %c0_6] : memref<8x128xf32, #tpu.memory_space<vmem>>, vector<8x128xf32>
    tpu.vector_store %arg4[%c0_5, %c0_6], %5 {strides = array<i32>} : memref<8x128xf32, #tpu.memory_space<vmem>>, vector<8x128xf32>,
    return
  }
  func.func @transform_0(%arg0: i32) -> (i32, i32) {
    %c0_i32 = arith.constant 0 : i32
    %c0_i32_0 = arith.constant 0 : i32
    return %arg0, %c0_i32 : i32, i32
  }
  func.func @transform_1(%arg0: i32) -> (i32, i32) {
    %c0_i32 = arith.constant 0 : i32
    %c0_i32_0 = arith.constant 0 : i32
    %c0_i32_1 = arith.constant 0 : i32
    return %c0_i32, %c0_i32_0 : i32, i32
  }
  func.func @transform_2(%arg0: i32) -> (i32, i32) {
    %c0_i32 = arith.constant 0 : i32
    %c0_i32_0 = arith.constant 0 : i32
    %c0_i32_1 = arith.constant 0 : i32
    return %c0_i32, %c0_i32_0 : i32, i32
  }
  func.func @transform_3(%arg0: i32) -> (i32, i32) {
    %c0_i32 = arith.constant 0 : i32
    %c0_i32_0 = arith.constant 0 : i32
    return %arg0, %c0_i32 : i32, i32
  }
}

</mosaic_0001>

<bundles_post_ra>
// kernel: tpu_custom_call.1
= control target key start
LH: loop header
LB: loop body
LE: loop exit
PB: predicated region body
PF: predicated region fallthrough
CT: control target
= control target key end

     0   :  { %8 = vsyncpa [#allocation3], 0  ;;  %s591_s0 = inlined_call_operand.hbm [shape: f32[8,768], index: 0, kind: input, shape index: {}]   ;;  %s592_s1 = inlined_call_operand.hbm [shape: f32[768,128], index: 1, kind: input, shape index: {}]   ;;  %s593_s2 = inlined_call_operand.vmem [shape: f32[1,128], index: 2, kind: input, shape index: {}]   ;;  %s594_s3 = inlined_call_operand.hbm [shape: f32[8,128], index: 3, kind: output, shape index: {}]  }
   0x1   :  { %9 = vsyncpa [#allocation6], 0 }
   0x2   :  { %10 = vsyncpa [#allocation4], 0  ;;  %s554_s12 = smov [#allocation2]   ;;  %s555_s14 = smov [#allocation5]  }
   0x3   :  { %s17_s13 = sshll.u32 %s554_s12, 4  ;;  %s26_s15 = sshll.u32 %s555_s14, 4  ;;  %s18_s13 = int_to_ptr.vmem [resolvable:$true] %s17_s13  ;;  %s27_s15 = int_to_ptr.vmem [resolvable:$true] %s26_s15 }
   0x4   :  { %s496_s16 = scalar_lea.vmem %s18_s13, 768  ;;  %p501_p1 = scmp.lt.s32.totalorder %s18_s13, %s18_s13 }
   0x5   :  { %p497_p0 = scmp.ne.s32.totalorder %s18_s13, %s496_s16  ;;  %p502_p2 = scmp.lt.s32.totalorder %s496_s16, %s496_s16 }
   0x7   :  { %p503_p3 = por %p502_p2, %p501_p1 }
   0x9   :  { %p504_p4 = pnand %p503_p3, %p497_p0 }
   0xb   :  { %507 = shalt.err (!%p504_p4)
}
   0xc   :  { %20 = dma.hbm_to_vmem [thread:$0]  %s591_s0, 768, %s18_s13, [#allocation3]  }
   0xd   :  { %s516_s19 = scalar_lea.vmem %s27_s15, 12288  ;;  %p521_p6 = scmp.lt.s32.totalorder %s27_s15, %s27_s15 }
   0xe   :  { %p517_p5 = scmp.ne.s32.totalorder %s27_s15, %s516_s19  ;;  %p522_p7 = scmp.lt.s32.totalorder %s516_s19, %s516_s19 }
  0x10   :  { %p523_p8 = por %p522_p7, %p521_p6 }
  0x12   :  { %p524_p9 = pnand %p523_p8, %p517_p5 }
  0x14   :  { %527 = shalt.err (!%p524_p9)
}
  0x15   :  { %s556_s20 = smov 128   ;;  %s557_s21 = smov 8  }
  0x16   :  { %32 = dma.hbm_to_vmem [thread:$0]  %s592_s1, 12288, %s27_s15, [#allocation6], %s556_s20, %s556_s20, %s557_s21  }
  0x17   :  { %548 = dma.done.wait [#allocation3], 768  }
  0x18   :  { %549 = vsyncadd [#allocation3], 4294966528 }
  0x19   :  { %550 = dma.done.wait [#allocation6], 12288  }
  0x1a   :  { %551 = vsyncadd [#allocation6], 4294955008  ;;  %v78_v0 = vld [vmem:[#allocation5 + $0xf8] sm:$0xff]  ;;  %v77_v2 = vld [vmem:[#allocation5 + $0xf0] sm:$0xff]  ;;  %s558_s24 = smov [#allocation7]  }
  0x1b   :  { %v62_v1 = vld [vmem:[#allocation5 + $0x78] sm:$0xff]  ;;  %378 = vmatprep.subr.mxu0 %v78_v0  ;;  %v61_v4 = vld [vmem:[#allocation5 + $0x70] sm:$0xff]  ;;  %v76_v6 = vld [vmem:[#allocation5 + $0xe8] sm:$0xff]  ;;  %s367_s25 = sshll.u32 %s558_s24, 4  ;;  %s368_s25 = int_to_ptr.vmem [resolvable:$true] %s367_s25 }
  0x1c   :  { %v110_v3 = vld [vmem:[#allocation5 + $0x1f8] sm:$0xff]  ;;  %379 = vmatpush3.msra.mxu0 %v62_v1  ;;  %v109_v7 = vld [vmem:[#allocation5 + $0x1f0] sm:$0xff]  ;;  %v60_v8 = vld [vmem:[#allocation5 + $0x68] sm:$0xff]  ;;  %s528_s26 = scalar_lea.vmem %s368_s25, 128  ;;  %p533_p11 = scmp.lt.s32.totalorder %s368_s25, %s368_s25 }
  0x1d   :  { %v94_v5 = vld [vmem:[#allocation5 + $0x178] sm:$0xff]  ;;  %413 = vmatprep.subr.mxu1 %v110_v3  ;;  %380 = vmatprep.subr.mxu0 %v77_v2  ;;  %v93_v9 = vld [vmem:[#allocation5 + $0x170] sm:$0xff]  ;;  %v108_v10 = vld [vmem:[#allocation5 + $0x1e8] sm:$0xff]  ;;  %p529_p10 = scmp.ne.s32.totalorder %s368_s25, %s528_s26  ;;  %p534_p12 = scmp.lt.s32.totalorder %s528_s26, %s528_s26 }
  0x1e   :  { %414 = vmatpush3.msra.mxu1 %v94_v5  ;;  %381 = vmatpush3.msra.mxu0 %v61_v4  ;;  %v75_v11 = vld [vmem:[#allocation5 + $0xe0] sm:$0xff]  ;;  %v92_v12 = vld [vmem:[#allocation5 + $0x168] sm:$0xff]  ;;  %v74_v15 = vld [vmem:[#allocation5 + $0xd8] sm:$0xff] }
  0x1f   :  { %415 = vmatprep.subr.mxu1 %v109_v7  ;;  %382 = vmatprep.subr.mxu0 %v76_v6  ;;  %v59_v13 = vld [vmem:[#allocation5 + $0x60] sm:$0xff]  ;;  %v58_v17 = vld [vmem:[#allocation5 + $0x58] sm:$0xff]  ;;  %v73_v19 = vld [vmem:[#allocation5 + $0xd0] sm:$0xff]  ;;  %p535_p13 = por %p534_p12, %p533_p11 }
  0x20   :  { %416 = vmatpush3.msra.mxu1 %v93_v9  ;;  %v107_v14 = vld [vmem:[#allocation5 + $0x1e0] sm:$0xff]  ;;  %383 = vmatpush3.msra.mxu0 %v60_v8  ;;  %v106_v18 = vld [vmem:[#allocation5 + $0x1d8] sm:$0xff]  ;;  %v57_v21 = vld [vmem:[#allocation5 + $0x50] sm:$0xff] }
  0x21   :  { %417 = vmatprep.subr.mxu1 %v108_v10  ;;  %v91_v16 = vld [vmem:[#allocation5 + $0x160] sm:$0xff]  ;;  %384 = vmatprep.subr.mxu0 %v75_v11  ;;  %v90_v20 = vld [vmem:[#allocation5 + $0x158] sm:$0xff]  ;;  %v105_v22 = vld [vmem:[#allocation5 + $0x1d0] sm:$0xff]  ;;  %p536_p0 = pnand %p535_p13, %p529_p10 }
  0x22   :  { %418 = vmatpush3.msra.mxu1 %v92_v12  ;;  %385 = vmatpush3.msra.mxu0 %v59_v13  ;;  %v72_v23 = vld [vmem:[#allocation5 + $0xc8] sm:$0xff]  ;;  %v89_v24 = vld [vmem:[#allocation5 + $0x150] sm:$0xff]  ;;  %v71_v27 = vld [vmem:[#allocation5 + $0xc0] sm:$0xff] }
  0x23   :  { %419 = vmatprep.subr.mxu1 %v107_v14  ;;  %386 = vmatprep.subr.mxu0 %v74_v15  ;;  %v56_v25 = vld [vmem:[#allocation5 + $0x48] sm:$0xff]  ;;  %v55_v29 = vld [vmem:[#allocation5 + $0x40] sm:$0xff]  ;;  %v70_v31 = vld [vmem:[#allocation5 + $0xb8] sm:$0xff] }
  0x24   :  { %420 = vmatpush3.msra.mxu1 %v91_v16  ;;  %387 = vmatpush3.msra.mxu0 %v58_v17  ;;  %v104_v26 = vld [vmem:[#allocation5 + $0x1c8] sm:$0xff]  ;;  %v103_v30 = vld [vmem:[#allocation5 + $0x1c0] sm:$0xff]  ;;  %v54_v33 = vld [vmem:[#allocation5 + $0x38] sm:$0xff] }
  0x25   :  { %421 = vmatprep.subr.mxu1 %v106_v18  ;;  %388 = vmatprep.subr.mxu0 %v73_v19  ;;  %v88_v28 = vld [vmem:[#allocation5 + $0x148] sm:$0xff]  ;;  %v87_v32 = vld [vmem:[#allocation5 + $0x140] sm:$0xff]  ;;  %v102_v34 = vld [vmem:[#allocation5 + $0x1b8] sm:$0xff] }
  0x26   :  { %422 = vmatpush3.msra.mxu1 %v90_v20  ;;  %389 = vmatpush3.msra.mxu0 %v57_v21  ;;  %v69_v35 = vld [vmem:[#allocation5 + $0xb0] sm:$0xff]  ;;  %v86_v36 = vld [vmem:[#allocation5 + $0x138] sm:$0xff]  ;;  %v68_v39 = vld [vmem:[#allocation5 + $0xa8] sm:$0xff] }
  0x27   :  { %423 = vmatprep.subr.mxu1 %v105_v22  ;;  %390 = vmatprep.subr.mxu0 %v72_v23  ;;  %v53_v37 = vld [vmem:[#allocation5 + $0x30] sm:$0xff]  ;;  %v52_v41 = vld [vmem:[#allocation5 + $0x28] sm:$0xff]  ;;  %v67_v43 = vld [vmem:[#allocation5 + $0xa0] sm:$0xff] }
  0x28   :  { %424 = vmatpush3.msra.mxu1 %v89_v24  ;;  %391 = vmatpush3.msra.mxu0 %v56_v25  ;;  %v101_v38 = vld [vmem:[#allocation5 + $0x1b0] sm:$0xff]  ;;  %v100_v42 = vld [vmem:[#allocation5 + $0x1a8] sm:$0xff]  ;;  %v51_v45 = vld [vmem:[#allocation5 + $0x20] sm:$0xff] }
  0x29   :  { %425 = vmatprep.subr.mxu1 %v104_v26  ;;  %392 = vmatprep.subr.mxu0 %v71_v27  ;;  %v85_v40 = vld [vmem:[#allocation5 + $0x130] sm:$0xff]  ;;  %v84_v44 = vld [vmem:[#allocation5 + $0x128] sm:$0xff]  ;;  %v99_v46 = vld [vmem:[#allocation5 + $0x1a0] sm:$0xff] }
  0x2a   :  { %426 = vmatpush3.msra.mxu1 %v88_v28  ;;  %393 = vmatpush3.msra.mxu0 %v55_v29  ;;  %v66_v47 = vld [vmem:[#allocation5 + $0x98] sm:$0xff]  ;;  %v83_v48 = vld [vmem:[#allocation5 + $0x120] sm:$0xff]  ;;  %v65_v51 = vld [vmem:[#allocation5 + $0x90] sm:$0xff] }
  0x2b   :  { %427 = vmatprep.subr.mxu1 %v103_v30  ;;  %394 = vmatprep.subr.mxu0 %v70_v31  ;;  %v50_v49 = vld [vmem:[#allocation5 + $0x18] sm:$0xff]  ;;  %v49_v53 = vld [vmem:[#allocation5 + $0x10] sm:$0xff]  ;;  %v64_v55 = vld [vmem:[#allocation5 + $0x88] sm:$0xff] }
  0x2c   :  { %428 = vmatpush3.msra.mxu1 %v87_v32  ;;  %395 = vmatpush3.msra.mxu0 %v54_v33  ;;  %v98_v50 = vld [vmem:[#allocation5 + $0x198] sm:$0xff]  ;;  %v97_v54 = vld [vmem:[#allocation5 + $0x190] sm:$0xff]  ;;  %v48_v57 = vld [vmem:[#allocation5 + $0x8] sm:$0xff] }
  0x2d   :  { %429 = vmatprep.subr.mxu1 %v102_v34  ;;  %396 = vmatprep.subr.mxu0 %v69_v35  ;;  %v82_v52 = vld [vmem:[#allocation5 + $0x118] sm:$0xff]  ;;  %v81_v56 = vld [vmem:[#allocation5 + $0x110] sm:$0xff]  ;;  %v96_v58 = vld [vmem:[#allocation5 + $0x188] sm:$0xff] }
  0x2e   :  { %430 = vmatpush3.msra.mxu1 %v86_v36  ;;  %397 = vmatpush3.msra.mxu0 %v53_v37  ;;  %v63_v59 = vld [vmem:[#allocation5 + $0x80] sm:$0xff]  ;;  %v42_v60 = vld [vmem:[#allocation2 + $0x8] sm:$0xff]  ;;  %v80_v62 = vld [vmem:[#allocation5 + $0x108] sm:$0xff] }
  0x2f   :  { %431 = vmatprep.subr.mxu1 %v101_v38  ;;  %398 = vmatprep.subr.mxu0 %v68_v39  ;;  %v47_v61 = vld [vmem:[#allocation5] sm:$0xff]  ;;  %v41_v63 = vld [vmem:[#allocation2] sm:$0xff]  ;;  %v142_v1 = vld [vmem:[#allocation5 + $0x2f8] sm:$0xff] }
  0x30   :  { %432 = vmatpush3.msra.mxu1 %v85_v40  ;;  %399 = vmatpush3.msra.mxu0 %v52_v41  ;;  %v95_v0 = vld [vmem:[#allocation5 + $0x180] sm:$0xff]  ;;  %v44_v3 = vld [vmem:[#allocation2 + $0x18] sm:$0xff]  ;;  %v126_v4 = vld [vmem:[#allocation5 + $0x278] sm:$0xff] }
  0x31   :  { %433 = vmatprep.subr.mxu1 %v100_v42  ;;  %400 = vmatprep.subr.mxu0 %v67_v43  ;;  %v79_v2 = vld [vmem:[#allocation5 + $0x100] sm:$0xff]  ;;  %v141_v6 = vld [vmem:[#allocation5 + $0x2f0] sm:$0xff]  ;;  %v46_v8 = vld [vmem:[#allocation2 + $0x28] sm:$0xff] }
  0x32   :  { %434 = vmatpush3.msra.mxu1 %v84_v44  ;;  %401 = vmatpush3.msra.mxu0 %v51_v45  ;;  %v43_v5 = vld [vmem:[#allocation2 + $0x10] sm:$0xff]  ;;  %v125_v7 = vld [vmem:[#allocation5 + $0x270] sm:$0xff]  ;;  %v140_v9 = vld [vmem:[#allocation5 + $0x2e8] sm:$0xff] }
  0x33   :  { %435 = vmatprep.subr.mxu1 %v99_v46  ;;  %402 = vmatprep.subr.mxu0 %v66_v47  ;;  %v124_v10 = vld [vmem:[#allocation5 + $0x268] sm:$0xff]  ;;  %v139_v11 = vld [vmem:[#allocation5 + $0x2e0] sm:$0xff]  ;;  %v138_v13 = vld [vmem:[#allocation5 + $0x2d8] sm:$0xff] }
  0x34   :  { %436 = vmatpush3.msra.mxu1 %v83_v48  ;;  %403 = vmatpush3.msra.mxu0 %v50_v49  ;;  %v123_v12 = vld [vmem:[#allocation5 + $0x260] sm:$0xff]  ;;  %v122_v14 = vld [vmem:[#allocation5 + $0x258] sm:$0xff]  ;;  %v137_v15 = vld [vmem:[#allocation5 + $0x2d0] sm:$0xff] }
  0x35   :  { %437 = vmatprep.subr.mxu1 %v98_v50  ;;  %404 = vmatprep.subr.mxu0 %v65_v51  ;;  %v121_v16 = vld [vmem:[#allocation5 + $0x250] sm:$0xff]  ;;  %v136_v17 = vld [vmem:[#allocation5 + $0x2c8] sm:$0xff]  ;;  %v135_v19 = vld [vmem:[#allocation5 + $0x2c0] sm:$0xff] }
  0x36   :  { %438 = vmatpush3.msra.mxu1 %v82_v52  ;;  %405 = vmatpush3.msra.mxu0 %v49_v53  ;;  %v120_v18 = vld [vmem:[#allocation5 + $0x248] sm:$0xff]  ;;  %v119_v20 = vld [vmem:[#allocation5 + $0x240] sm:$0xff]  ;;  %v134_v21 = vld [vmem:[#allocation5 + $0x2b8] sm:$0xff] }
  0x37   :  { %439 = vmatprep.subr.mxu1 %v97_v54  ;;  %406 = vmatprep.subr.mxu0 %v64_v55  ;;  %v118_v22 = vld [vmem:[#allocation5 + $0x238] sm:$0xff]  ;;  %v133_v23 = vld [vmem:[#allocation5 + $0x2b0] sm:$0xff]  ;;  %v132_v25 = vld [vmem:[#allocation5 + $0x2a8] sm:$0xff] }
  0x38   :  { %440 = vmatpush3.msra.mxu1 %v81_v56  ;;  %407 = vmatpush3.msra.mxu0 %v48_v57  ;;  %v117_v24 = vld [vmem:[#allocation5 + $0x230] sm:$0xff]  ;;  %v116_v26 = vld [vmem:[#allocation5 + $0x228] sm:$0xff]  ;;  %v131_v27 = vld [vmem:[#allocation5 + $0x2a0] sm:$0xff] }
  0x39   :  { %441 = vmatprep.subr.mxu1 %v96_v58  ;;  %408 = vmatprep.subr.mxu0 %v63_v59  ;;  %v115_v28 = vld [vmem:[#allocation5 + $0x220] sm:$0xff]  ;;  %v130_v29 = vld [vmem:[#allocation5 + $0x298] sm:$0xff]  ;;  %v129_v31 = vld [vmem:[#allocation5 + $0x290] sm:$0xff] }
  0x3a   :  { %214 = vmatprep.mubr.f32.mxu0 %v42_v60  ;;  %409 = vmatpush3.msra.mxu0 %v47_v61  ;;  %v114_v30 = vld [vmem:[#allocation5 + $0x218] sm:$0xff]  ;;  %v113_v32 = vld [vmem:[#allocation5 + $0x210] sm:$0xff]  ;;  %v128_v33 = vld [vmem:[#allocation5 + $0x288] sm:$0xff] }
  0x3b   :  { %442 = vmatpush3.msra.mxu1 %v80_v62  ;;  %215 = vmatmul.mubr.f32.vlgmr.msra.gmra.mxu0 %v41_v63  ;;  %v112_v34 = vld [vmem:[#allocation5 + $0x208] sm:$0xff]  ;;  %v127_v35 = vld [vmem:[#allocation5 + $0x280] sm:$0xff]  ;;  %v45_v37 = vld [vmem:[#allocation2 + $0x20] sm:$0xff] }
  0x3c   :  { %443 = vmatprep.subr.mxu1 %v95_v0  ;;  %448 = vmatprep.subr.mxu0 %v142_v1  ;;  %v111_v36 = vld [vmem:[#allocation5 + $0x200] sm:$0xff]  ;;  %v377_v42 = vld [vmem:[%s593_s2] ss:$0 sm:$0xff] }
  0x3d   :  { %444 = vmatpush3.msra.mxu1 %v79_v2  ;;  %284 = vmatprep.mubr.f32.mxu1 %v44_v3 }
  0x3e   :  { %449 = vmatpush3.msra.mxu0 %v126_v4  ;;  %285 = vmatmul.mubr.f32.vlgmr.msra.gmra.mxu1 %v43_v5 }
  0x3f   :  { %450 = vmatprep.subr.mxu0 %v141_v6  ;;  %354 = vmatprep.mubr.f32.mxu0 %v46_v8 }
  0x40   :  { %451 = vmatpush3.msra.mxu0 %v125_v7 }
  0x41   :  { %452 = vmatprep.subr.mxu0 %v140_v9 }
  0x42   :  { %453 = vmatpush3.msra.mxu0 %v124_v10 }
  0x43   :  { %454 = vmatprep.subr.mxu0 %v139_v11 }
  0x44   :  { %455 = vmatpush3.msra.mxu0 %v123_v12 }
  0x45   :  { %456 = vmatprep.subr.mxu0 %v138_v13 }
  0x46   :  { %457 = vmatpush3.msra.mxu0 %v122_v14 }
  0x47   :  { %458 = vmatprep.subr.mxu0 %v137_v15 }
  0x48   :  { %459 = vmatpush3.msra.mxu0 %v121_v16 }
  0x49   :  { %460 = vmatprep.subr.mxu0 %v136_v17 }
  0x4a   :  { %461 = vmatpush3.msra.mxu0 %v120_v18 }
  0x4b   :  { %462 = vmatprep.subr.mxu0 %v135_v19 }
  0x4c   :  { %463 = vmatpush3.msra.mxu0 %v119_v20 }
  0x4d   :  { %464 = vmatprep.subr.mxu0 %v134_v21 }
  0x4e   :  { %465 = vmatpush3.msra.mxu0 %v118_v22 }
  0x4f   :  { %466 = vmatprep.subr.mxu0 %v133_v23 }
  0x50   :  { %467 = vmatpush3.msra.mxu0 %v117_v24 }
  0x51   :  { %468 = vmatprep.subr.mxu0 %v132_v25 }
  0x52   :  { %469 = vmatpush3.msra.mxu0 %v116_v26 }
  0x53   :  { %470 = vmatprep.subr.mxu0 %v131_v27 }
  0x54   :  { %471 = vmatpush3.msra.mxu0 %v115_v28 }
  0x55   :  { %472 = vmatprep.subr.mxu0 %v130_v29 }
  0x56   :  { %473 = vmatpush3.msra.mxu0 %v114_v30 }
  0x57   :  { %474 = vmatprep.subr.mxu0 %v129_v31 }
  0x58   :  { %475 = vmatpush3.msra.mxu0 %v113_v32 }
  0x59   :  { %476 = vmatprep.subr.mxu0 %v128_v33 }
  0x5a   :  { %477 = vmatpush3.msra.mxu0 %v112_v34 }
  0x5b   :  { %478 = vmatprep.subr.mxu0 %v127_v35 }
  0x5c   :  { %479 = vmatpush3.msra.mxu0 %v111_v36 }
  0x5d   :  { %355 = vmatmul.mubr.f32.vlgmr.msra.gmra.mxu0 %v45_v37 }
  0xfb   :  { %v410_v38 = vpop.f32.mrf.mxu0 }
  0xfd   :  { %v411_v39 = vpop.f32.mrf.mxu0 }
  0xfe   :  { %v445_v40 = vpop.f32.mrf.mxu1  ;;  %v412_v41 = vadd.f32 %v411_v39, %v410_v38 }
 0x100   :  { %v446_v43 = vpop.f32.mrf.mxu1  ;;  %v217_v44 = vadd.f32 %v412_v41, %v377_v42 }
 0x101   :  { %v447_v45 = vadd.f32 %v446_v43, %v445_v40 }
 0x103   :  { %v287_v48 = vadd.f32 %v447_v45, %v217_v44 }
 0x11d   :  { %v480_v46 = vpop.f32.mrf.mxu0 }
 0x11f   :  { %v481_v47 = vpop.f32.mrf.mxu0 }
 0x120   :  { %v482_v49 = vadd.f32 %v481_v47, %v480_v46 }
 0x122   :  { %v357_v50 = vadd.f32 %v482_v49, %v287_v48 }
 0x124   :  { %360 = vst [vmem:[#allocation7] sm:$0xff] %v357_v50 }
 0x125   :  { %539 = shalt.err (!%p536_p0)
}
 0x126   :  { %370 = dma.vmem_to_hbm [thread:$0]  %s368_s25, 128, %s594_s3, [#allocation4]  }
 0x127   :  { %552 = dma.done.wait [#allocation4], 128  }
 0x128   :  { %553 = vsyncadd [#allocation4], 4294967168 }
 0x129   :  { %374 = vsyncpa [#allocation3], 1 }
 0x12a   :  { %375 = vsyncpa [#allocation6], 1 }
 0x12b   :  { %376 = vsyncpa [#allocation4], 1 }

</bundles_post_ra>
